<compile_context>
chip_gen: v5e
topology: v5e:2x2
jax: 0.10.0
libtpu: 0.0.40
codegen_flags: <defaults>
</compile_context>

<pallas_src>
import jax
import jax.numpy as jnp
from jax.experimental import pallas as pl
from jax.experimental.pallas import tpu as pltpu


def _preemphasis_kernel(coef):
    coef = float(coef)

    def kernel(x_ref, o_ref, carry_ref):
        t = pl.program_id(1)                # T-tile index (innermost grid axis)
        x = x_ref[...]                      # (TB, TT) tile in VMEM

        # prev[:, k] = x[:, k-1]; column 0 wraps to the tile's last column and
        # is fixed below via the carry / reflect boundary.
        prev = pltpu.roll(x, shift=1, axis=1)

        # First T-tile: reflect pad -> previous sample of column 0 is x[:, 1].
        @pl.when(t == 0)
        def _():
            carry_ref[...] = x[:, 1:2]

        boundary = carry_ref[...]           # (TB, 1) previous sample of column 0

        o_ref[...] = x - coef * prev
        o_ref[:, 0:1] = x[:, 0:1] - coef * boundary

        # Carry this tile's last sample into the next T-tile (same batch row).
        carry_ref[...] = x[:, -1:]

    return kernel


def pre_emphasis(x, coef: float = 0.97, *, t_tile: int = 2048, b_tile=None):
    """x: (B, T) float -> (B, T) float, y[t] = x[t] - coef * x[t-1] (reflect pad)."""
    B, T = x.shape
    dtype = x.dtype

    # ---- sublane (batch) tile ------------------------------------------------
    # Full-dim block if B is small; otherwise a multiple of 8 (partial last
    # block at the boundary is legal: OOB rows are garbage-in / dropped-out).
    if b_tile is None:
        b_tile = 128
    if B <= b_tile:
        b_tile = B
    else:
        b_tile = max(8, (b_tile // 8) * 8)

    # ---- lane (time) tile ----------------------------------------------------
    # Multiple of 128 (partial last block at the boundary is legal); clamp to
    # the smallest 128-multiple covering T so a short signal uses one tile.
    if T <= 128:
        t_tile = T                                     # full-dim block
    else:
        t_tile = max(128, (t_tile // 128) * 128)
        t_tile = min(t_tile, ((T + 127) // 128) * 128)

    grid = (pl.cdiv(B, b_tile), pl.cdiv(T, t_tile))    # T last -> carry axis

    return pl.pallas_call(
        _preemphasis_kernel(coef),
        out_shape=jax.ShapeDtypeStruct((B, T), dtype),
        grid_spec=pltpu.PrefetchScalarGridSpec(
            num_scalar_prefetch=0,
            grid=grid,
            in_specs=[pl.BlockSpec((b_tile, t_tile), lambda i, j: (i, j))],
            out_specs=pl.BlockSpec((b_tile, t_tile), lambda i, j: (i, j)),
            scratch_shapes=[pltpu.VMEM((b_tile, 1), dtype)],
        ),
        compiler_params=pltpu.CompilerParams(
            dimension_semantics=("parallel", "arbitrary"),
        ),
        cost_estimate=pl.CostEstimate(
            flops=2 * B * T,
            transcendentals=0,
            bytes_accessed=2 * B * T * int(x.dtype.itemsize),
        ),
    )(x)


def _reference(x, coef=0.97):
    # Pure-JAX reference replicating torch reflect-pad + conv1d([-coef, 1.0]).
    left = x[:, 1:2]                              # reflect pad element x[:, 1]
    padded = jnp.concatenate([left, x], axis=1)   # (B, T+1)
    return padded[:, 1:] - coef * padded[:, :-1]


if __name__ == "__main__":
    key = jax.random.PRNGKey(0)
    k1, k2, k3 = jax.random.split(key, 3)
    coef = 0.97

    # Case 1: T a multiple of the tile -> exercises the carry across 4 T-tiles.
    B, T = 4, 1024
    x1 = jax.random.normal(k1, (B, T), dtype=jnp.float32)
    y1 = jax.block_until_ready(pre_emphasis(x1, coef, t_tile=256))
    assert y1.shape == (B, T) and y1.dtype == jnp.float32
    assert jnp.allclose(y1, _reference(x1, coef), atol=1e-5, rtol=1e-5)

    # Case 2: ragged T -> exercises the partial last lane-tile (no host pad).
    B2, T2 = 4, 1000
    x2 = jax.random.normal(k2, (B2, T2), dtype=jnp.float32)
    y2 = jax.block_until_ready(pre_emphasis(x2, coef, t_tile=256))
    assert y2.shape == (B2, T2)
    assert jnp.allclose(y2, _reference(x2, coef), atol=1e-5, rtol=1e-5)

    # Case 3: ragged B -> exercises the partial last sublane-tile + carry.
    B3, T3 = 10, 640
    x3 = jax.random.normal(k3, (B3, T3), dtype=jnp.float32)
    y3 = jax.block_until_ready(pre_emphasis(x3, coef, t_tile=256, b_tile=8))
    assert y3.shape == (B3, T3)
    assert jnp.allclose(y3, _reference(x3, coef), atol=1e-5, rtol=1e-5)

    print("KERNEL_OK")
</pallas_src>

<mosaic_0001>
module attributes {stable_mosaic.version = 11 : i64} {
  func.func @kernel(%arg0: i32, %arg1: i32, %arg2: memref<4x256xf32, #tpu.memory_space<vmem>>, %arg3: memref<4x256xf32, #tpu.memory_space<vmem>>, %arg4: memref<4x1xf32, #tpu.memory_space<vmem>>) attributes {dimension_semantics = [#tpu.dimension_semantics<parallel>, #tpu.dimension_semantics<arbitrary>], iteration_bounds = array<i64: 1, 4>, scalar_prefetch = 0 : i64, scratch_operands = 1 : i64, tpu.core_type = #tpu.core_type<tc>, window_params = [{transform_indices = @transform_0, window_bounds = array<i64: 4, 256>}, {transform_indices = @transform_1, window_bounds = array<i64: 4, 256>}]} {
    %c0 = arith.constant 0 : index
    %c0_0 = arith.constant 0 : index
    %0 = vector.load %arg2[%c0, %c0_0] : memref<4x256xf32, #tpu.memory_space<vmem>>, vector<4x256xf32>
    %c1_i32 = arith.constant 1 : i32
    %1 = tpu.dynamic_rotate %0 by %c1_i32 dim 1 : vector<4x256xf32>, i32 -> vector<4x256xf32>
    %c0_i32 = arith.constant 0 : i32
    %2 = arith.cmpi eq, %arg1, %c0_i32 : i32
    %3 = arith.extui %2 : i1 to i32
    %c0_i32_1 = arith.constant 0 : i32
    %4 = arith.cmpi ne, %3, %c0_i32_1 : i32
    scf.if %4 {
      %17 = vector.extract_strided_slice %0 {offsets = [0, 1], sizes = [4, 1], strides = [1, 1]} : vector<4x256xf32> to vector<4x1xf32>
      %c0_11 = arith.constant 0 : index
      %c0_12 = arith.constant 0 : index
      %18 = vector.load %arg4[%c0_11, %c0_12] : memref<4x1xf32, #tpu.memory_space<vmem>>, vector<4x1xf32>
      tpu.vector_store %arg4[%c0_11, %c0_12], %17 {strides = array<i32>} : memref<4x1xf32, #tpu.memory_space<vmem>>, vector<4x1xf32>,
    } else {
    }
    %c0_2 = arith.constant 0 : index
    %c0_3 = arith.constant 0 : index
    %5 = vector.load %arg4[%c0_2, %c0_3] : memref<4x1xf32, #tpu.memory_space<vmem>>, vector<4x1xf32>
    %cst = arith.constant 9.700000e-01 : f32
    %6 = vector.broadcast %cst : f32 to vector<4x256xf32>
    %7 = arith.mulf %6, %1 : vector<4x256xf32>
    %8 = arith.subf %0, %7 : vector<4x256xf32>
    %c0_4 = arith.constant 0 : index
    %c0_5 = arith.constant 0 : index
    %9 = vector.load %arg3[%c0_4, %c0_5] : memref<4x256xf32, #tpu.memory_space<vmem>>, vector<4x256xf32>
    tpu.vector_store %arg3[%c0_4, %c0_5], %8 {strides = array<i32>} : memref<4x256xf32, #tpu.memory_space<vmem>>, vector<4x256xf32>,
    %10 = vector.extract_strided_slice %0 {offsets = [0, 0], sizes = [4, 1], strides = [1, 1]} : vector<4x256xf32> to vector<4x1xf32>
    %cst_6 = arith.constant 9.700000e-01 : f32
    %11 = vector.broadcast %cst_6 : f32 to vector<4x1xf32>
    %12 = arith.mulf %11, %5 : vector<4x1xf32>
    %13 = arith.subf %10, %12 : vector<4x1xf32>
    %c0_7 = arith.constant 0 : index
    %c0_8 = arith.constant 0 : index
    %14 = vector.load %arg3[%c0_7, %c0_8] : memref<4x256xf32, #tpu.memory_space<vmem>>, vector<4x1xf32>
    tpu.vector_store %arg3[%c0_7, %c0_8], %13 {strides = array<i32>} : memref<4x256xf32, #tpu.memory_space<vmem>>, vector<4x1xf32>,
    %15 = vector.extract_strided_slice %0 {offsets = [0, 255], sizes = [4, 1], strides = [1, 1]} : vector<4x256xf32> to vector<4x1xf32>
    %c0_9 = arith.constant 0 : index
    %c0_10 = arith.constant 0 : index
    %16 = vector.load %arg4[%c0_9, %c0_10] : memref<4x1xf32, #tpu.memory_space<vmem>>, vector<4x1xf32>
    tpu.vector_store %arg4[%c0_9, %c0_10], %15 {strides = array<i32>} : memref<4x1xf32, #tpu.memory_space<vmem>>, vector<4x1xf32>,
    return
  }
  func.func @transform_0(%arg0: i32, %arg1: i32) -> (i32, i32) {
    %c0_i32 = arith.constant 0 : i32
    return %arg0, %arg1 : i32, i32
  }
  func.func @transform_1(%arg0: i32, %arg1: i32) -> (i32, i32) {
    %c0_i32 = arith.constant 0 : i32
    return %arg0, %arg1 : i32, i32
  }
}

</mosaic_0001>

<bundles_post_ra>
// kernel: tpu_custom_call.1
= control target key start
LH: loop header
LB: loop body
LE: loop exit
PB: predicated region body
PF: predicated region fallthrough
CT: control target
= control target key end

     0   :  { %6 = vsyncpa [#allocation4], 0  ;;  %s640_s0 = inlined_call_operand.hbm [shape: f32[4,1024], index: 0, kind: input, shape index: {}]   ;;  %s641_s1 = inlined_call_operand.hbm [shape: f32[4,1024], index: 1, kind: output, shape index: {}]  }
   0x1   :  { %8 = vsyncpa [#allocation4 + $0x1], 0 }
   0x2   :  { %9 = vsyncpa [#allocation5], 0 }
   0x3   :  { %11 = vsyncpa [#allocation5 + $0x1], 0  ;;  %s514_s6 = smov 0   ;;  %s516_s7 = smov 0  }
   0x4   :  { %s518_s8 = smov 0   ;;  %s520_s9 = smov 0  }
   0x5   :  { %s522_s10 = smov 0   ;;  %s524_s11 = smov 0  }
   0x6 LB: > { %s306_s12 = sadd.s32 4294967295, %s500_s11   ;;  %s307_s13 = sadd.s32 4294967294, %s500_s11   ;;  %s500_s11 = sphi %s524_s11, %s17_s11   ;;  %s496_s10 = sphi %s522_s10, %s650_s10   ;;  %s492_s9 = sphi %s520_s9, %s649_s9   ;;  %s488_s8 = sphi %s518_s8, %s648_s8   ;;  %s484_s7 = sphi %s516_s7, %s647_s7   ;;  %s480_s6 = sphi %s514_s6, %s646_s6  }
   0x7   : > { %s26_s14 = sadd.s32 1, %s496_s10  ;;  %s38_s15 = sadd.s32 1, %s488_s8 }
   0x8   : > { %p27_p0 = scmp.ge.s32.totalorder %s26_s14, 4  ;;  %p45_p1 = scmp.ne.s32.totalorder %s488_s8, %s484_s7 }
   0x9   : > { %p46_p2 = scmp.eq.s32.totalorder %s500_s11, 0  ;;  %p51_p3 = scmp.ne.s32.totalorder %s484_s7, %s480_s6 }
   0xa   : > { %s652_s14 = smov (%p27_p0, %s26_s14), 0  ;;  %p52_p5 = scmp.eq.s32.totalorder %s306_s12, 0 }
   0xb   : > { %p555_p4 = por %p46_p2, %p45_p1  ;;  %s34_s17 = ssub.s32 %s496_s10, %s652_s14 }
   0xc   : > { %p77_p6 = scmp.eq.s32.totalorder %s306_s12, 3  ;;  %p36_p7 = scmp.eq.s32.totalorder %s34_s17, 0 }
   0xd   : > { %p561_p8 = por %p52_p5, %p51_p3  ;;  %p83_p10 = scmp.eq.s32.totalorder %s307_s13, 3 }
   0xe   : > { %p565_p9 = por %p77_p6, %p45_p1  ;;  %p336_p12 = scmp.lt.s32.totalorder %s500_s11, 4 }
   0xf   : > { %s570_s20 = scalar_select %p36_p7, %s488_s8, %s38_s15  }
  0x10   : > { %p572_p11 = por %p83_p10, %p51_p3  ;;  %s103_s22 = sand.u32 1, %s488_s8  }
  0x11   : > { %s310_s23 = sshll.u32 %s103_s22, 3  ;;  %s322_s24 = sshll.u32 %s496_s10, 3 }
  0x12   : > { %s114_s27 = scalar_lea.hbm %s640_s0, %s322_s24  ;;  %s107_s28 = scalar_lea.vmem [#allocation3], %s310_s23 }
  0x13   : > { %s118_s29 = sshll.u32 %s107_s28, 4  ;;  %s116_s30 = sshll.u32 %s114_s27, 4  ;;  %s119_s29 = int_to_ptr.vmem [resolvable:$true] %s118_s29  ;;  %s117_s30 = int_to_ptr.hbm [resolvable:$true] %s116_s30 }
  0x14   : > { %p329_p13 = pnand %p336_p12, %p555_p4  ;;  %p313_p0 = scmp.ge.s32.totalorder %s500_s11, 1 }
  0x15   : > { %p123_p1 = scmp.lt.s32.totalorder %s500_s11, 5  ;;  %s104_s2 = scalar_lea.sflag [#allocation4], %s103_s22 }
  0x16   : > { %331 = dma.hbm_to_vmem [thread:$0]  (!%p329_p13), %s117_s30, 128, %s119_s29, %s104_s2  }
  0x17   : > { %p124_p2 = pnand %p313_p0, %p123_p1 }
  0x18   : > { %s587_s3 = sand.u32 (!%p124_p2), 1, %s484_s7  }
  0x19   : > { %127 = sbr.rel (%p124_p2) target bundleno = 412 (0x19c), region = 24  ;;  %s314_s4 = sshll.u32 (!%p124_p2), %s587_s3, 3 }
  0x1a   : > { %s130_s5 = scalar_lea.sflag (!%p124_p2), [#allocation4], %s587_s3  ;;  %s133_s12 = scalar_lea.vmem (!%p124_p2), [#allocation3], %s314_s4 }
  0x1e   : > { %471 = dma.done.wait (%p561_p8), %s130_s5, 128  }
  0x1f   : > { %473 = vsyncadd (%p561_p8), %s130_s5, 4294967168  ;;  %v155_v0 = vld [vmem:[%s133_s12] sm:$0xff]  ;;  %s502_s13 = smov 1   ;;  %v166_v3 = vlaneseq  ;;  %s595_s15 = scalar_lea.vmem [#allocation6], %s314_s4 }
  0x20   : > { %157 = vst [vmem:[#allocation1] ss:$2 sm:$0xff] %v155_v0  ;;  %p316_p3 = scmp.ne.s32.totalorder %s492_s9, 0 }
  0x21   : > { %v167_v5 = vand.u32 127, %v166_v3  ;;  %s503_s16 = smov (!%p316_p3), 127  }
  0x23   : > { %vm168_vm0 = vcmp.lt.s32.totalorder %v167_v5, 1 }
  0x27   : > { %v158_v1 = vld.sshfl [vmem:[#allocation1] sm:$0xff pattern:$0x75316420]  ;;  %v159_v2 = vld.sshfl [vmem:[#allocation1 + $0x8] sm:$0xff pattern:$0x75316420] }
  0x28   : > { %162 = vrot.lane.b32.xlu0 %v158_v1, %s502_s13 }
  0x30   : > { %164 = vrot.lane.b32.xlu0 %v159_v2, %s502_s13 }
  0x9a   : > { %v163_v4 = vpop.permute.xlu0 %162 }
  0x9f   : > { %174 = sbr.rel (%p316_p3) target bundleno = 288 (0x120), region = 32 }
  0xa2   : > { %v165_v6 = vpop.permute.xlu0 %164 }
  0xa3   : > { %v169_v7 = vsel %vm168_vm0, %v163_v4, %v165_v6  ;;  %v170_v8 = vsel %vm168_vm0, %v165_v6, %v163_v4 }
  0xa4   : > { %175 = vst [vmem:[#allocation1] ss:$2 sm:$0xff] %v155_v0  ;;  %vm180_vm1 = vcmask 3072  }
  0xab   : > { %v176_v9 = vld.sshfl [vmem:[#allocation1] sm:$0xff pattern:$0x75316420] }
  0xac   : > { %177 = vrot.lane.b32.xlu0 %v176_v9, %s503_s16 }
 0x11e   : > { %v178_v10 = vpop.permute.xlu0 %177 }
 0x11f   : > { %181 = vst.msk [vmem:[#allocation2] sm:$0xf] %vm180_vm1, %v178_v10 }
 0x120 PF: > { %197 = vst [vmem:[#allocation1] ss:$2 sm:$0xff] %v155_v0  ;;  %s323_s17 = sshll.u32 %s492_s9, 3  ;;  %v184_v14 = vmul.f32 0.97, %v169_v7  ;;  %vm188_vm2 = vcmask 1043456  }
 0x121   : > { %s217_s23 = scalar_lea.hbm %s641_s1, %s323_s17  ;;  %v183_v15 = vmul.f32 0.97, %v170_v8  ;;  %s219_s24 = sshll.u32 %s595_s15, 4  ;;  %vm195_vm3 = vcmask 3072   ;;  %s220_s24 = int_to_ptr.vmem [resolvable:$true] %s219_s24 }
 0x122   : > { %v187_v16 = vrot.slane %v184_v14, 4  ;;  %s221_s25 = sshll.u32 %s217_s23, 4  ;;  %s204_s9 = scalar_lea.sflag [#allocation5], %s587_s3  ;;  %s222_s25 = int_to_ptr.hbm [resolvable:$true] %s221_s25 }
 0x123   : > { %s432_s26 = sshra.s32 %s222_s25, 4  ;;  %s438_s30 = scalar_lea.hbm %s641_s1, 32  ;;  %s433_s26 = int_to_ptr.hbm [resolvable:$true] %s432_s26 }
 0x124   : > { %v189_v18 = vsel %vm188_vm2, %v183_v15, %v187_v16  ;;  %s434_s27 = scalar_lea.hbm %s433_s26, 8  ;;  %p439_p7 = scmp.lt.s32.totalorder %s433_s26, %s641_s1 }
 0x125   : > { %v191_v19 = vsub.f32 %v155_v0, %v189_v18  ;;  %p435_p4 = scmp.ne.s32.totalorder %s433_s26, %s434_s27  ;;  %p440_p8 = scmp.lt.s32.totalorder %s438_s30, %s434_s27 }
 0x126   : > { %v182_v12 = vld [vmem:[#allocation2] sm:$0xf] }
 0x127   : > { %v198_v11 = vld.sshfl [vmem:[#allocation1 + $0x8] sm:$0xff pattern:$0x75316420]  ;;  %v193_v13 = vmul.f32 0.97, %v182_v12  ;;  %192 = vst [vmem:[%s595_s15] sm:$0xff] %v191_v19  ;;  %p436_p5 = pnand %p435_p4, %p565_p9  ;;  %p441_p10 = por %p440_p8, %p439_p7 }
 0x128   : > { %199 = vrot.lane.b32.xlu0 %v198_v11, %s502_s13 }
 0x129   : > { %v194_v17 = vsub.f32 %v155_v0, %v193_v13  ;;  %p437_p6 = pneg %p436_p5 }
 0x12b   : > { %196 = vst.msk [vmem:[%s595_s15] sm:$0xf] %vm195_vm3, %v194_v17  ;;  %p442_p12 = pnand %p441_p10, %p437_p6 }
 0x12d   : > { %445 = shalt.err (!%p442_p12)
}
 0x12e   : > { %326 = dma.vmem_to_hbm [thread:$0]  (%p565_p9), %s220_s24, 128, %s222_s25, %s204_s9  }
 0x19a   : > { %v200_v20 = vpop.permute.xlu0 %199 }
 0x19b   : > { %202 = vst.msk [vmem:[#allocation2] sm:$0xf] %vm195_vm3, %v200_v20 }
 0x19c PF: > { %p337_p13 = scmp.ge.s32.totalorder %s500_s11, 2  ;;  %s233_s3 = sand.u32 1, %s480_s6  }
 0x19d   : > { %s234_s5 = scalar_lea.sflag [#allocation5], %s233_s3 }
 0x19e   : > { %p333_p0 = pnand %p337_p13, %p572_p11 }
 0x1a0   : > { %p334_p1 = pneg %p333_p0 }
 0x1a2   : > { %475 = dma.done.wait (%p334_p1), %s234_s5, 128  }
 0x1a3   : > { %477 = vsyncadd (%p334_p1), %s234_s5, 4294967168  ;;  %s17_s11 = sadd.s32 1, %s500_s11   ;;  %s646_s6 = smov %s484_s7 }
 0x1a4   : > { %p14_p2 = scmp.ge.s32.totalorder %s17_s11, 6   ;;  %s647_s7 = smov %s488_s8 }
 0x1a5   : > { %s648_s8 = smov %s570_s20  ;;  %s649_s9 = smov %s496_s10 }
 0x1a6   : > { %s650_s10 = smov %s652_s14  ;;  %16 = sbr.rel (!%p14_p2) target bundleno = 6 (0x6), region = 73 }
 0x1ab   :  { %240 = vsyncpa [#allocation4], 1 }
 0x1ac   :  { %242 = vsyncpa [#allocation4 + $0x1], 1 }
 0x1ad   :  { %243 = vsyncpa [#allocation5], 1 }
 0x1ae   :  { %245 = vsyncpa [#allocation5 + $0x1], 1 }

</bundles_post_ra>
